<compile_context>
chip_gen: v5e
topology: v5e:2x2
jax: 0.10.0
libtpu: 0.0.40
codegen_flags: <defaults>
</compile_context>

<pallas_src>
import functools

import jax
import jax.numpy as jnp
from jax.experimental import pallas as pl
from jax.experimental.pallas import tpu as pltpu

IMPLICIT_TEMP = 1.0 / 5.0


# ----------------------------- shared in-kernel math -----------------------------

def _concrete_compute(x, scaled_logits, u, inv_temp, out_dtype, approx_recip):
    """u: (bt, K, D) uniforms in [0,1) -> (out (bt, D), mask (bt, D) f32)."""
    u = jnp.clip(u, 1e-6, 1.0 - 1e-6)
    g = -jnp.log(-jnp.log(u))                             # Gumbel noise, (bt, K, D)
    # logits were already divided by (implicit_temp * temperature) in the wrapper,
    # so only the noise needs the constant 1/temperature multiply here.
    scores = scaled_logits[None, :, :] + g * inv_temp     # (1,1,D) + (bt,K,D)
    mx = jnp.max(scores, axis=-1, keepdims=True)
    e = jnp.exp(scores - mx)
    denom = jnp.sum(e, axis=-1, keepdims=True)            # (bt, K, 1)
    if approx_recip:
        p = e * pl.reciprocal(denom, approx=True)         # EUP recip + VALU mul
    else:
        p = e / denom                                     # backend-agnostic path
    m = jnp.max(p, axis=-2)                               # (bt, D) approximate k-hot mask
    out = (x.astype(jnp.float32) * m).astype(out_dtype)
    return out, m


def _concrete_max_prng_kernel(seed_ref, x_ref, logits_ref, *out_refs,
                              inv_temp, k, with_mask):
    """TPU-only path: Gumbel uniforms drawn from the hardware PRNG (no (B,K,D) HBM stream)."""
    bt, d = x_ref.shape
    # Distinct stream per batch tile so tiles stay independent under the parallel grid.
    pltpu.prng_seed(seed_ref[0] + pl.program_id(0))
    bits = pltpu.bitcast(pltpu.prng_random_bits((bt * k, d)), jnp.uint32)
    # uint32 bits -> uniform [0, 1): 23 random mantissa bits under exponent 0 -> [1,2) - 1.
    u = pltpu.bitcast((bits >> 9) | jnp.uint32(0x3F800000), jnp.float32) - 1.0
    out, m = _concrete_compute(x_ref[...], logits_ref[...], u.reshape(bt, k, d),
                               inv_temp, out_refs[0].dtype, approx_recip=True)
    out_refs[0][...] = out
    if with_mask:
        out_refs[1][...] = m


def _concrete_max_uniform_kernel(x_ref, logits_ref, u_ref, *out_refs,
                                 inv_temp, with_mask, approx_recip):
    """Portable path: uniforms supplied as an input (also used for reference testing)."""
    out, m = _concrete_compute(x_ref[...], logits_ref[...], u_ref[...],
                               inv_temp, out_refs[0].dtype, approx_recip=approx_recip)
    out_refs[0][...] = out
    if with_mask:
        out_refs[1][...] = m


# ----------------------------- wrapper -----------------------------

def _pick_batch_tile(batch, k, d):
    """Largest batch tile whose live per-tile data stays within a conservative VMEM budget.

    ~8 MiB of live tile data (noise + x/out/mask); with double buffering and headroom this
    stays under the 32 MiB scoped limit we request and is safe on v7x's 64 MiB VMEM as well
    as v5e/v6e's 128 MiB.
    """
    budget_bytes = 8 * 1024 * 1024
    per_row_bytes = (k + 4) * d * 4
    bt = max(1, budget_bytes // per_row_bytes)
    bt = min(bt, batch)
    if bt >= 8:
        bt -= bt % 8           # keep the sublane dim a multiple of 8
    return int(bt)


def concrete_max_forward(x, logits, k, *, temperature=10.0, seed=0, uniforms=None,
                         append=False, return_mask=False, batch_tile=None):
    """Pallas implementation of ConcreteMax.forward (n_samples=None path).

    Production path on TPU: Gumbel noise is generated inside the kernel from `seed`.
    On non-TPU backends (or when `uniforms` (B, K, D) is given explicitly), uniforms are
    consumed from an input array instead — this path is also used for bit-comparable testing
    against the pure-JAX reference.
    """
    B, D = x.shape
    if uniforms is not None:
        k = int(uniforms.shape[1])
    need_mask = bool(append or return_mask)
    on_tpu = jax.default_backend() == "tpu"

    # Glue: fold both temperatures into the (1, D) parameter once, outside the hot path.
    scaled_logits = logits.astype(jnp.float32) / (IMPLICIT_TEMP * float(temperature))
    inv_temp = 1.0 / float(temperature)

    bt = int(batch_tile) if batch_tile else _pick_batch_tile(B, k, D)
    grid = (pl.cdiv(B, bt),)

    out_shapes = [jax.ShapeDtypeStruct((B, D), x.dtype)]
    if need_mask:
        out_shapes.append(jax.ShapeDtypeStruct((B, D), jnp.float32))

    compiler_params = pltpu.CompilerParams(
        dimension_semantics=("parallel",),        # shard batch tiles across TCs on v7x
        vmem_limit_bytes=32 * 1024 * 1024,
    )

    if uniforms is None and on_tpu:
        # ---- in-kernel hardware PRNG path (TPU / Mosaic only) ----
        kernel = functools.partial(_concrete_max_prng_kernel, inv_temp=inv_temp,
                                   k=int(k), with_mask=need_mask)
        grid_spec = pltpu.PrefetchScalarGridSpec(
            num_scalar_prefetch=1,                # the RNG seed (SMEM)
            grid=grid,
            in_specs=[
                pl.BlockSpec((bt, D), lambda i, s: (i, 0)),   # x tile
                pl.BlockSpec((1, D), lambda i, s: (0, 0)),    # scaled logits (resident)
            ],
            out_specs=tuple(pl.BlockSpec((bt, D), lambda i, s: (i, 0))
                            for _ in out_shapes),
        )
        seed_arr = jnp.asarray(seed, dtype=jnp.int32).reshape((1,))
        results = pl.pallas_call(
            kernel,
            out_shape=tuple(out_shapes),
            grid_spec=grid_spec,
            compiler_params=compiler_params,
        )(seed_arr, x, scaled_logits)
    else:
        # ---- portable path: uniforms come in as an array ----
        if uniforms is None:
            uniforms = jax.random.uniform(jax.random.PRNGKey(int(seed)),
                                          (B, k, D), dtype=jnp.float32)
        kernel = functools.partial(_concrete_max_uniform_kernel, inv_temp=inv_temp,
                                   with_mask=need_mask, approx_recip=on_tpu)
        grid_spec = pltpu.PrefetchScalarGridSpec(
            num_scalar_prefetch=0,
            grid=grid,
            in_specs=[
                pl.BlockSpec((bt, D), lambda i: (i, 0)),
                pl.BlockSpec((1, D), lambda i: (0, 0)),
                pl.BlockSpec((bt, k, D), lambda i: (i, 0, 0)),
            ],
            out_specs=tuple(pl.BlockSpec((bt, D), lambda i: (i, 0))
                            for _ in out_shapes),
        )
        results = pl.pallas_call(
            kernel,
            out_shape=tuple(out_shapes),
            grid_spec=grid_spec,
            compiler_params=compiler_params,
        )(x, scaled_logits, uniforms.astype(jnp.float32))

    out = results[0]
    mask = results[1] if need_mask else None
    if append:
        out = jnp.concatenate([out, mask.astype(out.dtype)], axis=-1)   # glue: torch.cat
    if return_mask:
        return out, mask
    return out


# ----------------------------- pure-JAX reference -----------------------------

def _reference(x, logits, uniforms, *, temperature=10.0, append=False):
    u = jnp.clip(uniforms, 1e-6, 1.0 - 1e-6)
    g = -jnp.log(-jnp.log(u))
    scores = (logits[None, :, :] / IMPLICIT_TEMP + g) / temperature
    p = jax.nn.softmax(scores, axis=-1)
    m = jnp.max(p, axis=-2)
    out = x * m
    if append:
        out = jnp.concatenate([out, m], axis=-1)
    return out, m


if __name__ == "__main__":
    input_size = 32     # D
    k = 8               # number of concrete samples maxed into the k-hot mask
    batch = 4           # B
    temperature = 10.0

    key = jax.random.PRNGKey(0)
    k_logits, k_x, k_u = jax.random.split(key, 3)

    # Deterministic parameter init (matches nn.Parameter(torch.randn(1, input_size)) shape).
    logits = jax.random.normal(k_logits, (1, input_size), dtype=jnp.float32)
    x = jax.random.normal(k_x, (batch, input_size), dtype=jnp.float32)

    # --- Path 1: production path (in-kernel PRNG on TPU, wrapper-side uniforms elsewhere).
    out, mask = concrete_max_forward(x, logits, k, temperature=temperature,
                                     seed=0, return_mask=True)
    out, mask = jax.block_until_ready((out, mask))
    assert out.shape == (batch, input_size)
    assert mask.shape == (batch, input_size)
    assert bool(jnp.all(jnp.isfinite(out))) and bool(jnp.all(jnp.isfinite(mask)))
    assert bool(jnp.all(mask >= 0.0)) and bool(jnp.all(mask <= 1.0 + 1e-3))
    assert jnp.allclose(out, x * mask, atol=1e-6, rtol=1e-6)

    # --- Path 2: external uniforms, bit-comparable to the pure-JAX reference
    #     (tolerance loosened for the approx-reciprocal softmax normalization on TPU).
    uniforms = jax.random.uniform(k_u, (batch, k, input_size), dtype=jnp.float32)
    out2 = concrete_max_forward(x, logits, k, temperature=temperature, uniforms=uniforms)
    out2 = jax.block_until_ready(out2)
    ref, _ = _reference(x, logits, uniforms, temperature=temperature)
    assert out2.shape == (batch, input_size)
    assert jnp.allclose(out2, ref, atol=5e-3, rtol=5e-3), "mismatch vs pure-JAX reference"

    print("KERNEL_OK")
</pallas_src>

<mosaic_0001>
module attributes {stable_mosaic.version = 11 : i64} {
  func.func @_concrete_max_uniform_kernel(%arg0: i32, %arg1: memref<4x32xf32, #tpu.memory_space<vmem>>, %arg2: memref<1x32xf32, #tpu.memory_space<vmem>>, %arg3: memref<4x8x32xf32, #tpu.memory_space<vmem>>, %arg4: memref<4x32xf32, #tpu.memory_space<vmem>>, %arg5: memref<4x32xf32, #tpu.memory_space<vmem>>) attributes {dimension_semantics = [#tpu.dimension_semantics<parallel>], iteration_bounds = array<i64: 1>, scalar_prefetch = 0 : i64, scratch_operands = 0 : i64, tpu.core_type = #tpu.core_type<tc>, window_params = [{transform_indices = @transform_0, window_bounds = array<i64: 4, 32>}, {pipeline_mode = #tpu.pipeline_mode<synchronous>, transform_indices = @transform_1, window_bounds = array<i64: 1, 32>}, {transform_indices = @transform_2, window_bounds = array<i64: 4, 8, 32>}, {transform_indices = @transform_3, window_bounds = array<i64: 4, 32>}, {transform_indices = @transform_4, window_bounds = array<i64: 4, 32>}]} {
    %c0 = arith.constant 0 : index
    %c0_0 = arith.constant 0 : index
    %0 = vector.load %arg1[%c0, %c0_0] : memref<4x32xf32, #tpu.memory_space<vmem>>, vector<4x32xf32>
    %c0_1 = arith.constant 0 : index
    %c0_2 = arith.constant 0 : index
    %1 = vector.load %arg2[%c0_1, %c0_2] : memref<1x32xf32, #tpu.memory_space<vmem>>, vector<1x32xf32>
    %c0_3 = arith.constant 0 : index
    %c0_4 = arith.constant 0 : index
    %c0_5 = arith.constant 0 : index
    %2 = vector.load %arg3[%c0_3, %c0_4, %c0_5] : memref<4x8x32xf32, #tpu.memory_space<vmem>>, vector<4x8x32xf32>
    %cst = arith.constant 9.99999997E-7 : f32
    %cst_6 = arith.constant 0.999998986 : f32
    %3 = vector.broadcast %cst : f32 to vector<4x8x32xf32>
    %4 = arith.maximumf %3, %2 : vector<4x8x32xf32>
    %5 = vector.broadcast %cst_6 : f32 to vector<4x8x32xf32>
    %6 = arith.minimumf %5, %4 : vector<4x8x32xf32>
    %7 = math.log %6 : vector<4x8x32xf32>
    %cst_7 = arith.constant 0.000000e+00 : f32
    %8 = vector.broadcast %cst_7 : f32 to vector<4x8x32xf32>
    %9 = arith.subf %8, %7 : vector<4x8x32xf32>
    %10 = math.log %9 : vector<4x8x32xf32>
    %cst_8 = arith.constant 0.000000e+00 : f32
    %11 = vector.broadcast %cst_8 : f32 to vector<4x8x32xf32>
    %12 = arith.subf %11, %10 : vector<4x8x32xf32>
    %13 = vector.shape_cast %1 : vector<1x32xf32> to vector<1x1x32xf32>
    %cst_9 = arith.constant 1.000000e-01 : f32
    %14 = vector.broadcast %cst_9 : f32 to vector<4x8x32xf32>
    %15 = arith.mulf %12, %14 : vector<4x8x32xf32>
    %16 = vector.broadcast %13 : vector<1x1x32xf32> to vector<4x8x32xf32>
    %17 = arith.addf %16, %15 : vector<4x8x32xf32>
    %cst_10 = arith.constant dense<0xFF800000> : vector<4x8xf32>
    %18 = vector.multi_reduction <maximumf>, %17, %cst_10 [2] : vector<4x8x32xf32> to vector<4x8xf32>
    %19 = vector.shape_cast %18 : vector<4x8xf32> to vector<4x8x1xf32>
    %20 = vector.broadcast %19 : vector<4x8x1xf32> to vector<4x8x32xf32>
    %21 = arith.subf %17, %20 : vector<4x8x32xf32>
    %22 = math.exp %21 : vector<4x8x32xf32>
    %cst_11 = arith.constant dense<0.000000e+00> : vector<4x8xf32>
    %23 = vector.multi_reduction <add>, %22, %cst_11 [2] : vector<4x8x32xf32> to vector<4x8xf32>
    %24 = vector.shape_cast %23 : vector<4x8xf32> to vector<4x8x1xf32>
    %25 = vector.broadcast %24 : vector<4x8x1xf32> to vector<4x8x32xf32>
    %26 = arith.divf %22, %25 : vector<4x8x32xf32>
    %cst_12 = arith.constant dense<0xFF800000> : vector<4x32xf32>
    %27 = vector.multi_reduction <maximumf>, %26, %cst_12 [1] : vector<4x8x32xf32> to vector<4x32xf32>
    %28 = arith.mulf %0, %27 : vector<4x32xf32>
    %c0_13 = arith.constant 0 : index
    %c0_14 = arith.constant 0 : index
    %29 = vector.load %arg4[%c0_13, %c0_14] : memref<4x32xf32, #tpu.memory_space<vmem>>, vector<4x32xf32>
    tpu.vector_store %arg4[%c0_13, %c0_14], %28 {strides = array<i32>} : memref<4x32xf32, #tpu.memory_space<vmem>>, vector<4x32xf32>,
    %c0_15 = arith.constant 0 : index
    %c0_16 = arith.constant 0 : index
    %30 = vector.load %arg5[%c0_15, %c0_16] : memref<4x32xf32, #tpu.memory_space<vmem>>, vector<4x32xf32>
    tpu.vector_store %arg5[%c0_15, %c0_16], %27 {strides = array<i32>} : memref<4x32xf32, #tpu.memory_space<vmem>>, vector<4x32xf32>,
    return
  }
  func.func @transform_0(%arg0: i32) -> (i32, i32) {
    %c0_i32 = arith.constant 0 : i32
    %c0_i32_0 = arith.constant 0 : i32
    return %arg0, %c0_i32 : i32, i32
  }
  func.func @transform_1(%arg0: i32) -> (i32, i32) {
    %c0_i32 = arith.constant 0 : i32
    %c0_i32_0 = arith.constant 0 : i32
    %c0_i32_1 = arith.constant 0 : i32
    return %c0_i32, %c0_i32_0 : i32, i32
  }
  func.func @transform_2(%arg0: i32) -> (i32, i32, i32) {
    %c0_i32 = arith.constant 0 : i32
    %c0_i32_0 = arith.constant 0 : i32
    %c0_i32_1 = arith.constant 0 : i32
    return %arg0, %c0_i32, %c0_i32_0 : i32, i32, i32
  }
  func.func @transform_3(%arg0: i32) -> (i32, i32) {
    %c0_i32 = arith.constant 0 : i32
    %c0_i32_0 = arith.constant 0 : i32
    return %arg0, %c0_i32 : i32, i32
  }
  func.func @transform_4(%arg0: i32) -> (i32, i32) {
    %c0_i32 = arith.constant 0 : i32
    %c0_i32_0 = arith.constant 0 : i32
    return %arg0, %c0_i32 : i32, i32
  }
}

</mosaic_0001>

<bundles_post_ra>
// kernel: tpu_custom_call.1
= control target key start
LH: loop header
LB: loop body
LE: loop exit
PB: predicated region body
PF: predicated region fallthrough
CT: control target
= control target key end

     0   :  { %10 = vsyncpa [#allocation3], 0  ;;  %s519_s0 = inlined_call_operand.hbm [shape: f32[4,32], index: 0, kind: input, shape index: {}]   ;;  %s520_s1 = inlined_call_operand.hbm [shape: f32[1,32], index: 1, kind: input, shape index: {}]   ;;  %s521_s2 = inlined_call_operand.hbm [shape: f32[4,8,32], index: 2, kind: input, shape index: {}]   ;;  %s522_s3 = inlined_call_operand.hbm [shape: f32[4,32], index: 3, kind: output, shape index: {0}]   ;;  %s523_s4 = inlined_call_operand.hbm [shape: f32[4,32], index: 4, kind: output, shape index: {1}]  }
   0x1   :  { %11 = vsyncpa [#allocation6], 0 }
   0x2   :  { %12 = vsyncpa [#allocation4], 0  ;;  %s30_s17 = sshll.u32 %s520_s1, 4  ;;  %s31_s17 = int_to_ptr.hbm [resolvable:$true] %s30_s17 }
   0x3   :  { %13 = vsyncpa [#allocation10], 0  ;;  %s452_s18 = smov [#allocation5]   ;;  %s19_s22 = sshll.u32 %s519_s0, 4  ;;  %s20_s22 = int_to_ptr.hbm [resolvable:$true] %s19_s22 }
   0x4   :  { %s32_s19 = sshll.u32 %s452_s18, 4  ;;  %s453_s23 = smov [#allocation2]   ;;  %s33_s19 = int_to_ptr.vmem [resolvable:$true] %s32_s19 }
   0x5   :  { %35 = dma.hbm_to_vmem [thread:$0]  %s31_s17, 16, %s33_s19, [#allocation6]  }
   0x6   :  { %s21_s24 = sshll.u32 %s453_s23, 4  ;;  %s40_s27 = sshll.u32 %s521_s2, 4  ;;  %s22_s24 = int_to_ptr.vmem [resolvable:$true] %s21_s24  ;;  %s41_s27 = int_to_ptr.hbm [resolvable:$true] %s40_s27 }
   0x7   :  { %24 = dma.hbm_to_vmem [thread:$0]  %s20_s22, 64, %s22_s24, [#allocation3]  }
   0x8   :  { %s454_s1 = smov [#allocation7]   ;;  %s455_s29 = smov 128  }
   0x9   :  { %s42_s28 = sshll.u32 %s454_s1, 4  ;;  %s456_s30 = smov 8   ;;  %s43_s28 = int_to_ptr.vmem [resolvable:$true] %s42_s28 }
   0xa   :  { %48 = dma.hbm_to_vmem [thread:$0]  %s41_s27, 512, %s43_s28, [#allocation6], %s455_s29, %s455_s29, %s456_s30  }
   0xb   :  { %444 = dma.done.wait [#allocation3], 64  }
   0xc   :  { %445 = vsyncadd [#allocation3], 4294967232 }
   0xd   :  { %446 = dma.done.wait [#allocation6], 528  }
   0xe   :  { %447 = vsyncadd [#allocation6], 4294966768  ;;  %v65_v0 = vld [vmem:[#allocation7 + $0x10] sm:$0xff]  ;;  %v63_v2 = vld [vmem:[#allocation7] sm:$0xff]  ;;  %vm110_vm0 = vcmask 261120   ;;  %s457_s0 = smov [#allocation9]  }
   0xf   :  { %v69_v1 = vmax.f32 %v65_v0, 1e-06  ;;  %v66_v3 = vld [vmem:[#allocation7 + $0x18] sm:$0xff]  ;;  %v64_v4 = vld [vmem:[#allocation7 + $0x8] sm:$0xff]  ;;  %v67_v5 = vmax.f32 %v63_v2, 1e-06 }
  0x10   :  { %v70_v6 = vmax.f32 %v66_v3, 1e-06  ;;  %v68_v7 = vmax.f32 %v64_v4, 1e-06  ;;  %v291_v31 = vld [vmem:[#allocation5] ss:$0 sm:$0xff] }
  0x11   :  { %v73_v8 = vmin.f32 %v69_v1, 0.999999  ;;  %v71_v9 = vmin.f32 %v67_v5, 0.999999  ;;  %s266_s2 = sshll.u32 %s457_s0, 4  ;;  %s268_s7 = sshll.u32 %s523_s4, 4  ;;  %s267_s2 = int_to_ptr.vmem [resolvable:$true] %s266_s2  ;;  %s269_s7 = int_to_ptr.hbm [resolvable:$true] %s268_s7 }
  0x12   :  { %v74_v10 = vmin.f32 %v70_v6, 0.999999  ;;  %v72_v11 = vmin.f32 %v68_v7, 0.999999  ;;  %s458_s8 = smov [#allocation8]   ;;  %s257_s12 = sshll.u32 %s522_s3, 4  ;;  %s258_s12 = int_to_ptr.hbm [resolvable:$true] %s257_s12 }
  0x13   :  { %292 = vlog2.f32 %v73_v8  ;;  %s255_s9 = sshll.u32 %s458_s8, 4  ;;  %s256_s9 = int_to_ptr.vmem [resolvable:$true] %s255_s9 }
  0x14   :  { %294 = vlog2.f32 %v71_v9 }
  0x15   :  { %296 = vlog2.f32 %v74_v10 }
  0x16   :  { %298 = vlog2.f32 %v72_v11 }
  0x19   :  { %v293_v12 = vpop.eup %292 }
  0x1a   :  { %v295_v13 = vpop.eup %294  ;;  %v80_v14 = vmul.f32 0.6931472, %v293_v12 }
  0x1b   :  { %v297_v15 = vpop.eup %296  ;;  %v76_v16 = vmul.f32 0.6931472, %v295_v13 }
  0x1c   :  { %v299_v17 = vpop.eup %298  ;;  %v85_v18 = vsub.f32 0.0, %v80_v14  ;;  %v82_v19 = vmul.f32 0.6931472, %v297_v15 }
  0x1d   :  { %v83_v20 = vsub.f32 0.0, %v76_v16  ;;  %v78_v21 = vmul.f32 0.6931472, %v299_v17 }
  0x1e   :  { %300 = vlog2.f32 %v85_v18  ;;  %v86_v22 = vsub.f32 0.0, %v82_v19 }
  0x1f   :  { %302 = vlog2.f32 %v83_v20  ;;  %v84_v23 = vsub.f32 0.0, %v78_v21 }
  0x20   :  { %304 = vlog2.f32 %v86_v22 }
  0x21   :  { %306 = vlog2.f32 %v84_v23 }
  0x24   :  { %v301_v24 = vpop.eup %300 }
  0x25   :  { %v303_v25 = vpop.eup %302  ;;  %v92_v26 = vmul.f32 0.6931472, %v301_v24 }
  0x26   :  { %v305_v27 = vpop.eup %304  ;;  %v88_v28 = vmul.f32 0.6931472, %v303_v25 }
  0x27   :  { %v307_v29 = vpop.eup %306  ;;  %v97_v30 = vsub.f32 0.0, %v92_v26  ;;  %v94_v32 = vmul.f32 0.6931472, %v305_v27 }
  0x28   :  { %v95_v33 = vsub.f32 0.0, %v88_v28  ;;  %v90_v34 = vmul.f32 0.6931472, %v307_v29 }
  0x29   :  { %v101_v35 = vmul.f32 0.1, %v97_v30  ;;  %v98_v36 = vsub.f32 0.0, %v94_v32 }
  0x2a   :  { %v99_v37 = vmul.f32 0.1, %v95_v33  ;;  %v96_v38 = vsub.f32 0.0, %v90_v34 }
  0x2b   :  { %v108_v39 = vadd.f32 %v291_v31, %v101_v35  ;;  %v102_v40 = vmul.f32 0.1, %v98_v36 }
  0x2c   :  { %v106_v41 = vadd.f32 %v291_v31, %v99_v37  ;;  %v100_v42 = vmul.f32 0.1, %v96_v38 }
  0x2d   :  { %v117_v43 = vsel %vm110_vm0, %v108_v39, -inf  ;;  %v109_v45 = vadd.f32 %v291_v31, %v102_v40 }
  0x2e   :  { %118 = vmax.xlane.f32.xlu1 %v117_v43  ;;  %v111_v44 = vsel %vm110_vm0, %v106_v41, -inf  ;;  %v107_v46 = vadd.f32 %v291_v31, %v100_v42 }
  0x2f   :  { %112 = vmax.xlane.f32.xlu0 %v111_v44  ;;  %v120_v47 = vsel %vm110_vm0, %v109_v45, -inf }
  0x30   :  { %v114_v48 = vsel %vm110_vm0, %v107_v46, -inf }
  0x36   :  { %121 = vmax.xlane.f32.xlu1 %v120_v47 }
  0x37   :  { %115 = vmax.xlane.f32.xlu0 %v114_v48 }
  0xa1   :  { %v119_v49 = vpop.xlane.xlu1 %118 }
  0xa2   :  { %v125_v50 = vsub.f32 %v108_v39, %v119_v49  ;;  %v113_v51 = vpop.xlane.xlu0 %112 }
  0xa3   :  { %v123_v52 = vsub.f32 %v106_v41, %v113_v51 }
  0xa4   :  { %v131_v53 = vmul.f32 1.442695, %v125_v50 }
  0xa5   :  { %v127_v54 = vmul.f32 1.442695, %v123_v52 }
  0xa6   :  { %308 = vpow2.f32 %v131_v53 }
  0xa7   :  { %310 = vpow2.f32 %v127_v54 }
  0xa9   :  { %v122_v55 = vpop.xlane.xlu1 %121 }
  0xaa   :  { %v126_v56 = vsub.f32 %v109_v45, %v122_v55  ;;  %v116_v57 = vpop.xlane.xlu0 %115 }
  0xab   :  { %v124_v58 = vsub.f32 %v107_v46, %v116_v57 }
  0xac   :  { %v309_v59 = vpop.eup %308  ;;  %v133_v60 = vmul.f32 1.442695, %v126_v56 }
  0xad   :  { %v311_v61 = vpop.eup %310  ;;  %v129_v62 = vmul.f32 1.442695, %v124_v58  ;;  %v141_v63 = vsel %vm110_vm0, %v309_v59, 0.0 }
  0xae   :  { %312 = vpow2.f32 %v133_v60  ;;  %142 = vadd.xlane.f32.xlu0 %v141_v63  ;;  %v135_v0 = vsel %vm110_vm0, %v311_v61, 0.0 }
  0xaf   :  { %314 = vpow2.f32 %v129_v62  ;;  %136 = vadd.xlane.f32.xlu2 %v135_v0 }
  0xb4   :  { %v499_v1 = vpop.eup %312 }
  0xb5   :  { %v501_v2 = vpop.eup %314  ;;  %v144_v3 = vsel %vm110_vm0, %v499_v1, 0.0 }
  0xb6   :  { %145 = vadd.xlane.f32.xlu1 %v144_v3  ;;  %v138_v4 = vsel %vm110_vm0, %v501_v2, 0.0 }
  0xb7   :  { %139 = vadd.xlane.f32.xlu2 %v138_v4 }
 0x121   :  { %v143_v5 = vpop.xlane.xlu0 %142 }
 0x122   :  { %v137_v6 = vpop.xlane.xlu2 %136  ;;  %316 = vrcp.f32 %v143_v5  ;;  %v188_v15 = vand.u32 2147483648, %v143_v5  ;;  %v186_v18 = vand.u32 2147483647, %v143_v5  ;;  %vm182_vm3 = vweird.f32 %v143_v5 }
 0x123   :  { %318 = vrcp.f32 %v137_v6  ;;  %v158_v16 = vand.u32 2147483648, %v137_v6  ;;  %v156_v20 = vand.u32 2147483647, %v137_v6  ;;  %vm152_vm4 = vweird.f32 %v137_v6 }
 0x124   :  { %v189_v24 = vor.u32 1.1754944e-38, %v188_v15  ;;  %vm187_vm7 = vcmp.eq.f32.partialorder %v186_v18, 8.507059e+37 }
 0x125   :  { %v159_v26 = vor.u32 1.1754944e-38, %v158_v16  ;;  %vm157_vm8 = vcmp.eq.f32.partialorder %v156_v20, 8.507059e+37  ;;  %v61_v16 = vld [vmem:[#allocation2] sm:$0xf] }
 0x128   :  { %v317_v7 = vpop.eup %316 }
 0x129   :  { %v319_v8 = vpop.eup %318  ;;  %v178_v9 = vmul.f32 %v317_v7, %v143_v5  ;;  %v146_v10 = vpop.xlane.xlu1 %145  ;;  %vm183_vm1 = vweird.f32 %v317_v7 }
 0x12a   :  { %v148_v11 = vmul.f32 %v319_v8, %v137_v6  ;;  %320 = vrcp.f32 %v146_v10  ;;  %v140_v12 = vpop.xlane.xlu2 %139  ;;  %vm153_vm2 = vweird.f32 %v319_v8  ;;  %vm184_vm5 = vmor %vm182_vm3, %vm183_vm1  ;;  %v201_v35 = vand.u32 2147483647, %v146_v10 }
 0x12b   :  { %v179_v13 = vsub.f32 1.0, %v178_v9  ;;  %322 = vrcp.f32 %v140_v12  ;;  %vm154_vm6 = vmor %vm152_vm4, %vm153_vm2  ;;  %v203_v37 = vand.u32 2147483648, %v146_v10  ;;  %v171_v39 = vand.u32 2147483647, %v140_v12 }
 0x12c   :  { %v149_v14 = vsub.f32 1.0, %v148_v11  ;;  %v173_v42 = vand.u32 2147483648, %v140_v12  ;;  %vm197_vm11 = vweird.f32 %v146_v10  ;;  %vm167_vm13 = vweird.f32 %v140_v12 }
 0x12d   :  { %v180_v17 = vmul.f32 %v317_v7, %v179_v13  ;;  %v204_v48 = vor.u32 1.1754944e-38, %v203_v37  ;;  %vm202_vm14 = vcmp.eq.f32.partialorder %v201_v35, 8.507059e+37  ;;  %vm172_vm1 = vcmp.eq.f32.partialorder %v171_v39, 8.507059e+37 }
 0x12e   :  { %v150_v19 = vmul.f32 %v319_v8, %v149_v14  ;;  %v174_v52 = vor.u32 1.1754944e-38, %v173_v42  ;;  %vm239_vm2 = vcmask 1041409   ;;  %vm241_vm3 = vcmask 1042434  }
 0x12f   :  { %v181_v21 = vadd.f32 %v317_v7, %v180_v17  ;;  %vm247_vm4 = vcmask 257024  }
 0x130   :  { %v321_v22 = vpop.eup %320  ;;  %v151_v23 = vadd.f32 %v319_v8, %v150_v19 }
 0x131   :  { %v323_v25 = vpop.eup %322  ;;  %v185_v27 = vsel %vm184_vm5, %v317_v7, %v181_v21  ;;  %v193_v28 = vmul.f32 %v321_v22, %v146_v10  ;;  %vm198_vm9 = vweird.f32 %v321_v22 }
 0x132   :  { %v155_v29 = vsel %vm154_vm6, %v319_v8, %v151_v23  ;;  %v190_v30 = vsel %vm187_vm7, %v189_v24, %v185_v27  ;;  %v163_v31 = vmul.f32 %v323_v25, %v140_v12  ;;  %vm168_vm10 = vweird.f32 %v323_v25  ;;  %vm199_vm12 = vmor %vm197_vm11, %vm198_vm9 }
 0x133   :  { %v160_v32 = vsel %vm157_vm8, %v159_v26, %v155_v29  ;;  %v191_v33 = vmul.f32 %v309_v59, %v190_v30  ;;  %v194_v34 = vsub.f32 1.0, %v193_v28  ;;  %vm169_vm15 = vmor %vm167_vm13, %vm168_vm10 }
 0x134   :  { %v161_v36 = vmul.f32 %v311_v61, %v160_v32  ;;  %v164_v38 = vsub.f32 1.0, %v163_v31 }
 0x135   :  { %v221_v40 = vsel %vm110_vm0, %v191_v33, -inf  ;;  %v195_v41 = vmul.f32 %v321_v22, %v194_v34 }
 0x136   :  { %v207_v43 = vsel %vm110_vm0, %v161_v36, -inf  ;;  %v222_v44 = vrot.slane %v221_v40, 4  ;;  %v165_v45 = vmul.f32 %v323_v25, %v164_v38 }
 0x137   :  { %v208_v46 = vrot.slane %v207_v43, 4  ;;  %v196_v47 = vadd.f32 %v321_v22, %v195_v41 }
 0x138   :  { %v166_v49 = vadd.f32 %v323_v25, %v165_v45  ;;  %v223_v53 = vmax.f32 %v221_v40, %v222_v44 }
 0x139   :  { %v209_v50 = vmax.f32 %v207_v43, %v208_v46  ;;  %v200_v51 = vsel %vm199_vm12, %v321_v22, %v196_v47 }
 0x13a   :  { %v205_v54 = vsel %vm202_vm14, %v204_v48, %v200_v51  ;;  %v170_v55 = vsel %vm169_vm15, %v323_v25, %v166_v49  ;;  %v224_v61 = vrot.slane %v223_v53, 2 }
 0x13b   :  { %v206_v56 = vmul.f32 %v499_v1, %v205_v54  ;;  %v175_v57 = vsel %vm172_vm1, %v174_v52, %v170_v55  ;;  %v210_v59 = vrot.slane %v209_v50, 2 }
 0x13c   :  { %v176_v58 = vmul.f32 %v501_v2, %v175_v57  ;;  %v225_v6 = vmax.f32 %v223_v53, %v224_v61 }
 0x13d   :  { %v228_v60 = vsel %vm110_vm0, %v206_v56, -inf  ;;  %v211_v4 = vmax.f32 %v209_v50, %v210_v59 }
 0x13e   :  { %v229_v62 = vrot.slane %v228_v60, 4  ;;  %v214_v63 = vsel %vm110_vm0, %v176_v58, -inf  ;;  %v226_v11 = vrot.slane %v225_v6, 1  ;;  %vm243_vm0 = vcmask 1043459  }
 0x13f   :  { %v215_v0 = vrot.slane %v214_v63, 4  ;;  %v212_v10 = vrot.slane %v211_v4, 1 }
 0x140   :  { %v230_v3 = vmax.f32 %v228_v60, %v229_v62  ;;  %v227_v15 = vmax.f32 %v225_v6, %v226_v11 }
 0x141   :  { %v216_v5 = vmax.f32 %v214_v63, %v215_v0  ;;  %v213_v14 = vmax.f32 %v211_v4, %v212_v10 }
 0x142   :  { %v231_v7 = vrot.slane %v230_v3, 2 }
 0x143   :  { %v217_v8 = vrot.slane %v216_v5, 2 }
 0x144   :  { %v232_v9 = vmax.f32 %v230_v3, %v231_v7 }
 0x145   :  { %v218_v1 = vmax.f32 %v216_v5, %v217_v8 }
 0x146   :  { %v233_v2 = vrot.slane %v232_v9, 1 }
 0x147   :  { %v219_v12 = vrot.slane %v218_v1, 1 }
 0x148   :  { %v234_v17 = vmax.f32 %v232_v9, %v233_v2 }
 0x149   :  { %v220_v13 = vmax.f32 %v218_v1, %v219_v12 }
 0x14b   :  { %v240_v18 = vsel %vm239_vm2, %v220_v13, %v213_v14 }
 0x14c   :  { %v242_v19 = vsel %vm241_vm3, %v227_v15, %v240_v18 }
 0x14d   :  { %v244_v20 = vsel %vm243_vm0, %v234_v17, %v242_v19 }
 0x14e   :  { %v246_v21 = vmul.f32 %v244_v20, %v61_v16  ;;  %249 = vst.msk [vmem:[#allocation9] sm:$0xf] %vm247_vm4, %v244_v20 }
 0x14f   :  { %271 = dma.vmem_to_hbm [thread:$0]  %s267_s2, 64, %s269_s7, [#allocation10]  }
 0x150   :  { %248 = vst.msk [vmem:[#allocation8] sm:$0xf] %vm247_vm4, %v246_v21 }
 0x151   :  { %260 = dma.vmem_to_hbm [thread:$0]  %s256_s9, 64, %s258_s12, [#allocation4]  }
 0x152   :  { %448 = dma.done.wait [#allocation4], 64  }
 0x153   :  { %449 = vsyncadd [#allocation4], 4294967232 }
 0x154   :  { %450 = dma.done.wait [#allocation10], 64  }
 0x155   :  { %451 = vsyncadd [#allocation10], 4294967232 }
 0x156   :  { %280 = vsyncpa [#allocation3], 1 }
 0x157   :  { %281 = vsyncpa [#allocation6], 1 }
 0x158   :  { %282 = vsyncpa [#allocation4], 1 }
 0x159   :  { %283 = vsyncpa [#allocation10], 1 }

</bundles_post_ra>
